<compile_context>
chip_gen: v7x
topology: tpu7x:2x2x1
jax: 0.10.0
libtpu: 0.0.40
codegen_flags: <defaults>
</compile_context>

<pallas_src>
import functools

import jax
import jax.numpy as jnp
from jax.experimental import pallas as pl
from jax.experimental.pallas import tpu as pltpu

INPUT_SIZE = 784
HIDDEN = 50
NUM_CLASSES = 10

HIDDEN_PAD = 128   # lane-dense hidden width (extra units are exact zeros after ReLU)
OUT_PAD = 128      # lane-dense output width (cols >= NUM_CLASSES are exact zeros)


def mlp_kernel(x_ref, w1_ref, b1_ref, w2_ref, b2_ref, o_ref):
    # fc1: (TB, 784) @ (784, 128) on the MXU, bf16 operands, f32 accumulation.
    h = jnp.dot(x_ref[...], w1_ref[...], preferred_element_type=jnp.float32)
    h = jnp.maximum(h + b1_ref[...], 0.0)                      # bias + ReLU on the VPU
    # fc2: (TB, 128) @ (128, 128), re-cast activations to bf16 for the MXU.
    out = jnp.dot(h.astype(jnp.bfloat16), w2_ref[...],
                  preferred_element_type=jnp.float32)
    o_ref[...] = (out + b2_ref[...]).astype(o_ref.dtype)


def _pad_params(w1, b1, w2, b2):
    """Zero-pad hidden (50->128) and output (10->128) widths; weights -> bf16."""
    w1p = jnp.zeros((INPUT_SIZE, HIDDEN_PAD), jnp.float32).at[:, :HIDDEN].set(w1)
    b1p = jnp.zeros((1, HIDDEN_PAD), jnp.float32).at[:, :HIDDEN].set(b1)
    w2p = jnp.zeros((HIDDEN_PAD, OUT_PAD), jnp.float32).at[:HIDDEN, :NUM_CLASSES].set(w2)
    b2p = jnp.zeros((1, OUT_PAD), jnp.float32).at[:, :NUM_CLASSES].set(b2)
    return w1p.astype(jnp.bfloat16), b1p, w2p.astype(jnp.bfloat16), b2p


@functools.partial(jax.jit, static_argnames=("tb",))
def mlp_forward(x, w1, b1, w2, b2, *, tb=256):
    B = x.shape[0]
    w1p, b1p, w2p, b2p = _pad_params(w1, b1, w2, b2)
    xb = x.astype(jnp.bfloat16)

    # Batch tile: full batch if small, otherwise a multiple-of-8 tile that keeps
    # x/out tiles comfortably inside VMEM on all of v5e/v6e/v7x (bf16 x tile at
    # TB=256 is ~0.4 MiB double-buffered).
    tb = min(tb, B)
    grid = (pl.cdiv(B, tb),)

    out_padded = pl.pallas_call(
        mlp_kernel,
        out_shape=jax.ShapeDtypeStruct((B, OUT_PAD), jnp.float32),
        grid=grid,
        in_specs=[
            pl.BlockSpec((tb, INPUT_SIZE), lambda i: (i, 0)),          # x: tiled over batch
            pl.BlockSpec((INPUT_SIZE, HIDDEN_PAD), lambda i: (0, 0)),  # W1: VMEM-resident
            pl.BlockSpec((1, HIDDEN_PAD), lambda i: (0, 0)),           # b1
            pl.BlockSpec((HIDDEN_PAD, OUT_PAD), lambda i: (0, 0)),     # W2
            pl.BlockSpec((1, OUT_PAD), lambda i: (0, 0)),              # b2
        ],
        out_specs=pl.BlockSpec((tb, OUT_PAD), lambda i: (i, 0)),
        compiler_params=pltpu.CompilerParams(
            dimension_semantics=("parallel",),   # shard batch tiles across TCs on v7x
            vmem_limit_bytes=64 << 20,
        ),
    )(xb, w1p, b1p, w2p, b2p)

    # Drop the lane-padding columns -> exact nn.Linear output width.
    return out_padded[:, :NUM_CLASSES]


def init_params(key):
    """Deterministic init mimicking nn.Linear's default U(-1/sqrt(fan_in), +).

    Weights are stored pre-transposed as (in_features, out_features) so the
    kernel computes plain x @ W + b.
    """
    k1, k2, k3, k4 = jax.random.split(key, 4)
    bound1 = 1.0 / jnp.sqrt(INPUT_SIZE)
    bound2 = 1.0 / jnp.sqrt(HIDDEN)
    w1 = jax.random.uniform(k1, (INPUT_SIZE, HIDDEN), jnp.float32, -bound1, bound1)
    b1 = jax.random.uniform(k2, (1, HIDDEN), jnp.float32, -bound1, bound1)
    w2 = jax.random.uniform(k3, (HIDDEN, NUM_CLASSES), jnp.float32, -bound2, bound2)
    b2 = jax.random.uniform(k4, (1, NUM_CLASSES), jnp.float32, -bound2, bound2)
    return w1, b1, w2, b2


if __name__ == "__main__":
    key = jax.random.PRNGKey(0)
    kx, kp = jax.random.split(key)
    batch = 64  # matches the PyTorch spec: x = torch.randn(64, 784)
    x = jax.random.normal(kx, (batch, INPUT_SIZE), jnp.float32)
    w1, b1, w2, b2 = init_params(kp)

    out = mlp_forward(x, w1, b1, w2, b2)
    out = jax.block_until_ready(out)

    # Reference with matching bf16 operand rounding (f32 accumulation).
    xb = x.astype(jnp.bfloat16).astype(jnp.float32)
    w1b = w1.astype(jnp.bfloat16).astype(jnp.float32)
    w2b = w2.astype(jnp.bfloat16).astype(jnp.float32)
    h_ref = jnp.maximum(xb @ w1b + b1, 0.0)
    ref = h_ref.astype(jnp.bfloat16).astype(jnp.float32) @ w2b + b2

    assert out.shape == (batch, NUM_CLASSES)
    assert jnp.allclose(out, ref, atol=5e-3, rtol=5e-3), float(
        jnp.max(jnp.abs(out - ref))
    )
    # Sanity vs. the full-f32 PyTorch-equivalent math (loose tolerance for bf16).
    ref_f32 = jnp.maximum(x @ w1 + b1, 0.0) @ w2 + b2
    assert jnp.allclose(out, ref_f32, atol=5e-2, rtol=5e-2)

    print("KERNEL_OK")
</pallas_src>

<mosaic_0001>
module attributes {stable_mosaic.version = 11 : i64} {
  func.func @mlp_kernel(%arg0: i32, %arg1: memref<64x784xbf16, #tpu.memory_space<vmem>>, %arg2: memref<784x128xbf16, #tpu.memory_space<vmem>>, %arg3: memref<1x128xf32, #tpu.memory_space<vmem>>, %arg4: memref<128x128xbf16, #tpu.memory_space<vmem>>, %arg5: memref<1x128xf32, #tpu.memory_space<vmem>>, %arg6: memref<64x128xf32, #tpu.memory_space<vmem>>) attributes {dimension_semantics = [#tpu.dimension_semantics<parallel>], iteration_bounds = array<i64: 1>, scalar_prefetch = 0 : i64, scratch_operands = 0 : i64, tpu.core_type = #tpu.core_type<tc>, window_params = [{transform_indices = @transform_0, window_bounds = array<i64: 64, 784>}, {pipeline_mode = #tpu.pipeline_mode<synchronous>, transform_indices = @transform_1, window_bounds = array<i64: 784, 128>}, {pipeline_mode = #tpu.pipeline_mode<synchronous>, transform_indices = @transform_2, window_bounds = array<i64: 1, 128>}, {pipeline_mode = #tpu.pipeline_mode<synchronous>, transform_indices = @transform_3, window_bounds = array<i64: 128, 128>}, {pipeline_mode = #tpu.pipeline_mode<synchronous>, transform_indices = @transform_4, window_bounds = array<i64: 1, 128>}, {transform_indices = @transform_5, window_bounds = array<i64: 64, 128>}]} {
    %c0 = arith.constant 0 : index
    %c0_0 = arith.constant 0 : index
    %0 = vector.load %arg1[%c0, %c0_0] : memref<64x784xbf16, #tpu.memory_space<vmem>>, vector<64x784xbf16>
    %c0_1 = arith.constant 0 : index
    %c0_2 = arith.constant 0 : index
    %1 = vector.load %arg2[%c0_1, %c0_2] : memref<784x128xbf16, #tpu.memory_space<vmem>>, vector<784x128xbf16>
    %cst = arith.constant dense<0.000000e+00> : vector<64x128xf32>
    %2 = tpu.matmul %0, %1, %cst {dimension_numbers = #tpu.dot_dimension_numbers<[1], [0], [0], [1], [0, 0, 1, 1], [], []>} : vector<64x784xbf16>, vector<784x128xbf16>, vector<64x128xf32> -> vector<64x128xf32>
    %c0_3 = arith.constant 0 : index
    %c0_4 = arith.constant 0 : index
    %3 = vector.load %arg3[%c0_3, %c0_4] : memref<1x128xf32, #tpu.memory_space<vmem>>, vector<1x128xf32>
    %4 = vector.broadcast %3 : vector<1x128xf32> to vector<64x128xf32>
    %5 = arith.addf %2, %4 : vector<64x128xf32>
    %cst_5 = arith.constant 0.000000e+00 : f32
    %6 = vector.broadcast %cst_5 : f32 to vector<64x128xf32>
    %7 = arith.maximumf %5, %6 : vector<64x128xf32>
    %8 = arith.truncf %7 : vector<64x128xf32> to vector<64x128xbf16>
    %c0_6 = arith.constant 0 : index
    %c0_7 = arith.constant 0 : index
    %9 = vector.load %arg4[%c0_6, %c0_7] : memref<128x128xbf16, #tpu.memory_space<vmem>>, vector<128x128xbf16>
    %cst_8 = arith.constant dense<0.000000e+00> : vector<64x128xf32>
    %10 = tpu.matmul %8, %9, %cst_8 {dimension_numbers = #tpu.dot_dimension_numbers<[1], [0], [0], [1], [0, 0, 1, 1], [], []>} : vector<64x128xbf16>, vector<128x128xbf16>, vector<64x128xf32> -> vector<64x128xf32>
    %c0_9 = arith.constant 0 : index
    %c0_10 = arith.constant 0 : index
    %11 = vector.load %arg5[%c0_9, %c0_10] : memref<1x128xf32, #tpu.memory_space<vmem>>, vector<1x128xf32>
    %12 = vector.broadcast %11 : vector<1x128xf32> to vector<64x128xf32>
    %13 = arith.addf %10, %12 : vector<64x128xf32>
    %c0_11 = arith.constant 0 : index
    %c0_12 = arith.constant 0 : index
    %14 = vector.load %arg6[%c0_11, %c0_12] : memref<64x128xf32, #tpu.memory_space<vmem>>, vector<64x128xf32>
    tpu.vector_store %arg6[%c0_11, %c0_12], %13 {strides = array<i32>} : memref<64x128xf32, #tpu.memory_space<vmem>>, vector<64x128xf32>,
    return
  }
  func.func @transform_0(%arg0: i32) -> (i32, i32) {
    %c0_i32 = arith.constant 0 : i32
    %c0_i32_0 = arith.constant 0 : i32
    return %arg0, %c0_i32 : i32, i32
  }
  func.func @transform_1(%arg0: i32) -> (i32, i32) {
    %c0_i32 = arith.constant 0 : i32
    %c0_i32_0 = arith.constant 0 : i32
    %c0_i32_1 = arith.constant 0 : i32
    return %c0_i32, %c0_i32_0 : i32, i32
  }
  func.func @transform_2(%arg0: i32) -> (i32, i32) {
    %c0_i32 = arith.constant 0 : i32
    %c0_i32_0 = arith.constant 0 : i32
    %c0_i32_1 = arith.constant 0 : i32
    return %c0_i32, %c0_i32_0 : i32, i32
  }
  func.func @transform_3(%arg0: i32) -> (i32, i32) {
    %c0_i32 = arith.constant 0 : i32
    %c0_i32_0 = arith.constant 0 : i32
    %c0_i32_1 = arith.constant 0 : i32
    return %c0_i32, %c0_i32_0 : i32, i32
  }
  func.func @transform_4(%arg0: i32) -> (i32, i32) {
    %c0_i32 = arith.constant 0 : i32
    %c0_i32_0 = arith.constant 0 : i32
    %c0_i32_1 = arith.constant 0 : i32
    return %c0_i32, %c0_i32_0 : i32, i32
  }
  func.func @transform_5(%arg0: i32) -> (i32, i32) {
    %c0_i32 = arith.constant 0 : i32
    %c0_i32_0 = arith.constant 0 : i32
    return %arg0, %c0_i32 : i32, i32
  }
}

</mosaic_0001>

<bundles_post_ra>
// kernel: mlp_forward.1
= control target key start
LH: loop header
LB: loop body
LE: loop exit
PB: predicated region body
PF: predicated region fallthrough
CT: control target
= control target key end

     0   :  { %10 = vsyncpa [#allocation3], 0  ;;  %s1750_s0 = inlined_call_operand.hbm [shape: bf16[64,784], index: 0, kind: input, shape index: {}]   ;;  %s1751_s1 = inlined_call_operand.hbm [shape: bf16[784,128], index: 1, kind: input, shape index: {}]   ;;  %s1752_s2 = inlined_call_operand.hbm [shape: f32[1,128], index: 2, kind: input, shape index: {}]   ;;  %s1753_s3 = inlined_call_operand.hbm [shape: bf16[128,128], index: 3, kind: input, shape index: {}]   ;;  %s1754_s4 = inlined_call_operand.hbm [shape: f32[1,128], index: 4, kind: input, shape index: {}]   ;;  %s1755_s5 = inlined_call_operand.hbm [shape: f32[64,128], index: 5, kind: output, shape index: {}]  }
   0x1   :  { %11 = vsyncpa [#allocation6], 0 }
   0x2   :  { %12 = vsyncpa [#allocation9], 0 }
   0x3   :  { %13 = vsyncpa [#allocation4], 0  ;;  %s1632_s18 = smov [#allocation5]   ;;  %s1492_s22 = scalar_lea.hbm %s1751_s1, 6272 }
   0x4   :  { %s31_s19 = sshll.u32 %s1632_s18, 4  ;;  %p1493_p0 = scmp.ne.s32.totalorder %s1751_s1, %s1492_s22  ;;  %s32_s19 = int_to_ptr.vmem [resolvable:$true] %s31_s19 }
   0x5   :  { %p1496_p1 = scmp.lt.u32.totalorder %s1492_s22, %s1751_s1 }
   0x7   :  { %p1498_p2 = pnand %p1496_p1, %p1493_p0 }
   0x9   :  { %1501 = shalt.err (!%p1498_p2)
}
   0xa   :  { %s1502_s27 = scalar_lea.vmem %s32_s19, 6272  ;;  %p1507_p4 = scmp.lt.s32.totalorder %s32_s19, %s32_s19 }
   0xb   :  { %p1503_p3 = scmp.ne.s32.totalorder %s32_s19, %s1502_s27  ;;  %p1508_p5 = scmp.lt.s32.totalorder %s1502_s27, %s1502_s27 }
   0xd   :  { %p1509_p6 = por %p1508_p5, %p1507_p4 }
   0xf   :  { %p1510_p7 = pnand %p1509_p6, %p1503_p3 }
  0x11   :  { %1513 = shalt.err (!%p1510_p7)
}
  0x12   :  { %s1633_s28 = smov 64   ;;  %s1634_s29 = smov 4  }
  0x13   :  { %37 = dma.hbm_to_vmem [thread:$0]  %s1751_s1, 6272, %s32_s19, [#allocation6], %s1633_s28, %s1633_s28, %s1634_s29  }
  0x14   :  { %s1635_s7 = smov [#allocation8]   ;;  %s1636_s9 = smov [#allocation2]  }
  0x15   :  { %s53_s8 = sshll.u32 %s1635_s7, 4  ;;  %s19_s10 = sshll.u32 %s1636_s9, 4  ;;  %s54_s8 = int_to_ptr.vmem [resolvable:$true] %s53_s8  ;;  %s20_s10 = int_to_ptr.vmem [resolvable:$true] %s19_s10 }
  0x16   :  { %s1514_s13 = scalar_lea.hbm %s1753_s3, 1024 }
  0x17   :  { %p1515_p8 = scmp.ne.s32.totalorder %s1753_s3, %s1514_s13  ;;  %p1518_p9 = scmp.lt.u32.totalorder %s1514_s13, %s1753_s3 }
  0x19   :  { %p1520_p10 = pnand %p1518_p9, %p1515_p8 }
  0x1b   :  { %1523 = shalt.err (!%p1520_p10)
}
  0x1c   :  { %s1524_s1 = scalar_lea.vmem %s54_s8, 1024  ;;  %p1529_p12 = scmp.lt.s32.totalorder %s54_s8, %s54_s8 }
  0x1d   :  { %p1525_p11 = scmp.ne.s32.totalorder %s54_s8, %s1524_s1  ;;  %p1530_p13 = scmp.lt.s32.totalorder %s1524_s1, %s1524_s1 }
  0x1f   :  { %p1531_p0 = por %p1530_p13, %p1529_p12 }
  0x21   :  { %p1532_p1 = pnand %p1531_p0, %p1525_p11 }
  0x23   :  { %1535 = shalt.err (!%p1532_p1)
}
  0x24   :  { %59 = dma.hbm_to_vmem [thread:$0]  %s1753_s3, 1024, %s54_s8, [#allocation9], %s1633_s28, %s1633_s28, %s1634_s29  }
  0x25   :  { %s1536_s22 = scalar_lea.hbm %s1750_s0, 3584 }
  0x26   :  { %p1537_p2 = scmp.ne.s32.totalorder %s1750_s0, %s1536_s22  ;;  %p1540_p3 = scmp.lt.u32.totalorder %s1536_s22, %s1750_s0 }
  0x28   :  { %p1542_p4 = pnand %p1540_p3, %p1537_p2 }
  0x2a   :  { %1545 = shalt.err (!%p1542_p4)
}
  0x2b   :  { %s1546_s27 = scalar_lea.vmem %s20_s10, 3584  ;;  %p1551_p6 = scmp.lt.s32.totalorder %s20_s10, %s20_s10 }
  0x2c   :  { %p1547_p5 = scmp.ne.s32.totalorder %s20_s10, %s1546_s27  ;;  %p1552_p7 = scmp.lt.s32.totalorder %s1546_s27, %s1546_s27 }
  0x2e   :  { %p1553_p8 = por %p1552_p7, %p1551_p6 }
  0x30   :  { %p1554_p9 = pnand %p1553_p8, %p1547_p5 }
  0x32   :  { %1557 = shalt.err (!%p1554_p9)
}
  0x33   :  { %s1637_s3 = smov 448   ;;  %s1638_s28 = smov 28  }
  0x34   :  { %25 = dma.hbm_to_vmem [thread:$0]  %s1750_s0, 3584, %s20_s10, [#allocation3], %s1637_s3, %s1637_s3, %s1638_s28  }
  0x35   :  { %s1639_s6 = smov [#allocation7]   ;;  %s1640_s8 = smov [#allocation10]  }
  0x36   :  { %s44_s7 = sshll.u32 %s1639_s6, 4  ;;  %s66_s9 = sshll.u32 %s1640_s8, 4  ;;  %s45_s7 = int_to_ptr.vmem [resolvable:$true] %s44_s7  ;;  %s67_s9 = int_to_ptr.vmem [resolvable:$true] %s66_s9 }
  0x37   :  { %s1558_s13 = scalar_lea.hbm %s1752_s2, 16 }
  0x38   :  { %p1559_p10 = scmp.ne.s32.totalorder %s1752_s2, %s1558_s13  ;;  %p1562_p11 = scmp.lt.u32.totalorder %s1558_s13, %s1752_s2 }
  0x3a   :  { %p1564_p12 = pnand %p1562_p11, %p1559_p10 }
  0x3c   :  { %1567 = shalt.err (!%p1564_p12)
}
  0x3d   :  { %s1568_s0 = scalar_lea.vmem %s45_s7, 16  ;;  %s1572_s10 = scalar_lea.vmem %s45_s7, 32 }
  0x3e   :  { %p1569_p13 = scmp.ne.s32.totalorder %s45_s7, %s1568_s0  ;;  %p1573_p0 = scmp.lt.s32.totalorder %s45_s7, %s45_s7 }
  0x3f   :  { %p1574_p1 = scmp.lt.s32.totalorder %s1572_s10, %s1568_s0 }
  0x41   :  { %p1575_p2 = por %p1574_p1, %p1573_p0 }
  0x43   :  { %p1576_p3 = pnand %p1575_p2, %p1569_p13 }
  0x45   :  { %1579 = shalt.err (!%p1576_p3)
}
  0x46   :  { %47 = dma.hbm_to_vmem [thread:$0]  %s1752_s2, 16, %s45_s7, [#allocation6]  }
  0x47   :  { %s1580_s21 = scalar_lea.hbm %s1754_s4, 16 }
  0x48   :  { %p1581_p4 = scmp.ne.s32.totalorder %s1754_s4, %s1580_s21  ;;  %p1584_p5 = scmp.lt.u32.totalorder %s1580_s21, %s1754_s4 }
  0x4a   :  { %p1586_p6 = pnand %p1584_p5, %p1581_p4 }
  0x4c   :  { %1589 = shalt.err (!%p1586_p6)
}
  0x4d   :  { %s1590_s26 = scalar_lea.vmem %s67_s9, 16  ;;  %s1594_s27 = scalar_lea.vmem %s67_s9, 32 }
  0x4e   :  { %p1591_p7 = scmp.ne.s32.totalorder %s67_s9, %s1590_s26  ;;  %p1595_p8 = scmp.lt.s32.totalorder %s67_s9, %s67_s9 }
  0x4f   :  { %p1596_p9 = scmp.lt.s32.totalorder %s1594_s27, %s1590_s26 }
  0x51   :  { %p1597_p10 = por %p1596_p9, %p1595_p8 }
  0x53   :  { %p1598_p11 = pnand %p1597_p10, %p1591_p7 }
  0x55   :  { %1601 = shalt.err (!%p1598_p11)
}
  0x56   :  { %69 = dma.hbm_to_vmem [thread:$0]  %s1754_s4, 16, %s67_s9, [#allocation9]  }
  0x57   :  { %1624 = dma.done.wait [#allocation3], 3584  }
  0x58   :  { %1625 = vsyncadd [#allocation3], 4294963712 }
  0x59   :  { %1626 = dma.done.wait [#allocation6], 6288  }
  0x5a   :  { %1627 = vsyncadd [#allocation6], 4294961008 }
  0x5b   :  { %1628 = dma.done.wait [#allocation9], 1040  }
  0x5c   :  { %1629 = vsyncadd [#allocation9], 4294966256  ;;  %v1395_v0 = vld [vmem:[#allocation5 + $0x40] sm:$0xff]   ;;  %v1399_v4 = vld [vmem:[#allocation5 + $0x48] sm:$0xff]   ;;  %vm657_vm0 = vcmask 130048   ;;  %s1641_s4 = smov [#allocation11]  }
  0x5d   :  { %v1396_v1 = vld [vmem:[#allocation5] sm:$0xff]   ;;  %1196 = vmatprep.subr.bf16.mxu0 %v1395_v0  ;;  %v1400_v5 = vld [vmem:[#allocation5 + $0x8] sm:$0xff]   ;;  %v1403_v8 = vld [vmem:[#allocation5 + $0x50] sm:$0xff]   ;;  %s1091_s28 = sshll.u32 %s1641_s4, 4  ;;  %s1092_s28 = int_to_ptr.vmem [resolvable:$true] %s1091_s28 }
  0x5e   :  { %v1397_v2 = vld [vmem:[#allocation5 + $0xc0] sm:$0xff]   ;;  %1197 = vmatpush3.bf16.msra.mxu0 %v1396_v1  ;;  %v1401_v6 = vld [vmem:[#allocation5 + $0xc8] sm:$0xff]   ;;  %v1404_v9 = vld [vmem:[#allocation5 + $0x10] sm:$0xff]   ;;  %s1602_s29 = scalar_lea.vmem %s1092_s28, 1024  ;;  %p1607_p13 = scmp.lt.s32.totalorder %s1092_s28, %s1092_s28 }
  0x5f   :  { %v1398_v3 = vld [vmem:[#allocation5 + $0x80] sm:$0xff]   ;;  %1236 = vmatprep.subr.bf16.mxu1 %v1397_v2  ;;  %1198 = vmatprep.subr.bf16.mxu0 %v1399_v4  ;;  %v1402_v7 = vld [vmem:[#allocation5 + $0x88] sm:$0xff]   ;;  %v1405_v10 = vld [vmem:[#allocation5 + $0xd0] sm:$0xff]   ;;  %p1603_p12 = scmp.ne.s32.totalorder %s1092_s28, %s1602_s29  ;;  %p1608_p0 = scmp.lt.s32.totalorder %s1602_s29, %s1602_s29 }
  0x60   :  { %1237 = vmatpush3.bf16.msra.mxu1 %v1398_v3  ;;  %v1406_v11 = vld [vmem:[#allocation5 + $0x90] sm:$0xff]   ;;  %v1407_v12 = vld [vmem:[#allocation5 + $0x58] sm:$0xff]   ;;  %v1411_v16 = vld [vmem:[#allocation5 + $0x60] sm:$0xff]  }
  0x61   :  { %1238 = vmatprep.subr.bf16.mxu1 %v1401_v6  ;;  %v1408_v13 = vld [vmem:[#allocation5 + $0x18] sm:$0xff]   ;;  %v1412_v17 = vld [vmem:[#allocation5 + $0x20] sm:$0xff]   ;;  %v1415_v20 = vld [vmem:[#allocation5 + $0x68] sm:$0xff]   ;;  %p1609_p1 = por %p1608_p0, %p1607_p13 }
  0x62   :  { %1199 = vmatpush3.bf16.msra.mxu0 %v1400_v5  ;;  %v1409_v14 = vld [vmem:[#allocation5 + $0xd8] sm:$0xff]   ;;  %v1413_v18 = vld [vmem:[#allocation5 + $0xe0] sm:$0xff]   ;;  %v1416_v21 = vld [vmem:[#allocation5 + $0x28] sm:$0xff]  }
  0x63   :  { %1200 = vmatprep.subr.bf16.mxu0 %v1403_v8  ;;  %v1410_v15 = vld [vmem:[#allocation5 + $0x98] sm:$0xff]   ;;  %v1414_v19 = vld [vmem:[#allocation5 + $0xa0] sm:$0xff]   ;;  %v1417_v22 = vld [vmem:[#allocation5 + $0xe8] sm:$0xff]   ;;  %p1610_p2 = pnand %p1609_p1, %p1603_p12 }
  0x64   :  { %1239 = vmatpush3.bf16.msra.mxu1 %v1402_v7  ;;  %v1418_v23 = vld [vmem:[#allocation5 + $0xa8] sm:$0xff]   ;;  %v1419_v24 = vld [vmem:[#allocation5 + $0x70] sm:$0xff]   ;;  %v1423_v28 = vld [vmem:[#allocation5 + $0x78] sm:$0xff]  }
  0x65   :  { %1240 = vmatprep.subr.bf16.mxu1 %v1405_v10  ;;  %v1420_v25 = vld [vmem:[#allocation5 + $0x30] sm:$0xff]   ;;  %v1424_v29 = vld [vmem:[#allocation5 + $0x38] sm:$0xff]   ;;  %v1428_v32 = vld [vmem:[#allocation2 + $0x4] ss:$28 sps:$4 sm:$0xff]  }
  0x66   :  { %1201 = vmatpush3.bf16.msra.mxu0 %v1404_v9  ;;  %v1421_v26 = vld [vmem:[#allocation5 + $0xf0] sm:$0xff]   ;;  %v1425_v30 = vld [vmem:[#allocation5 + $0xf8] sm:$0xff]   ;;  %702 = vmatprep.mubr.bf16.mxu0 %v1428_v32  ;;  %v1430_v34 = vld [vmem:[#allocation5 + $0x140] sm:$0xff]  }
  0x67   :  { %1202 = vmatprep.subr.bf16.mxu0 %v1407_v12  ;;  %v1422_v27 = vld [vmem:[#allocation5 + $0xb0] sm:$0xff]   ;;  %v1426_v31 = vld [vmem:[#allocation2] ss:$28 sps:$4 sm:$0xff]   ;;  %v1431_v35 = vld [vmem:[#allocation2 + $0x8] ss:$28 sps:$4 sm:$0xff]  }
  0x68   :  { %1241 = vmatpush3.bf16.msra.mxu1 %v1406_v11  ;;  %v1429_v33 = vld [vmem:[#allocation5 + $0xb8] sm:$0xff]   ;;  %v1433_v36 = vld [vmem:[#allocation2 + $0xc] ss:$28 sps:$4 sm:$0xff]   ;;  %v1434_v37 = vld [vmem:[#allocation5 + $0x100] sm:$0xff]  }
  0x69   :  { %1242 = vmatprep.subr.bf16.mxu1 %v1409_v14  ;;  %767 = vmatprep.mubr.bf16.mxu1 %v1433_v36  ;;  %v1435_v38 = vld [vmem:[#allocation5 + $0x148] sm:$0xff]   ;;  %v1437_v40 = vld [vmem:[#allocation2 + $0x3c] ss:$28 sps:$4 sm:$0xff]   ;;  %v1440_v42 = vld [vmem:[#allocation5 + $0x150] sm:$0xff]  }
  0x6a   :  { %1203 = vmatpush3.bf16.msra.mxu0 %v1408_v13  ;;  %v1436_v39 = vld [vmem:[#allocation5 + $0x108] sm:$0xff]   ;;  %v1439_v41 = vld [vmem:[#allocation2 + $0x38] ss:$28 sps:$4 sm:$0xff]   ;;  %v1441_v43 = vld [vmem:[#allocation2 + $0x44] ss:$28 sps:$4 sm:$0xff]  }
  0x6b   :  { %1204 = vmatprep.subr.bf16.mxu0 %v1411_v16  ;;  %v1443_v44 = vld [vmem:[#allocation5 + $0x110] sm:$0xff]   ;;  %v1444_v45 = vld [vmem:[#allocation2 + $0x40] ss:$28 sps:$4 sm:$0xff]   ;;  %v1456_v55 = vld [vmem:[#allocation5 + $0x168] sm:$0xff]  }
  0x6c   :  { %1243 = vmatpush3.bf16.msra.mxu1 %v1410_v15  ;;  %v1445_v46 = vld [vmem:[#allocation5 + $0x158] sm:$0xff]   ;;  %v1447_v48 = vld [vmem:[#allocation2 + $0x74] ss:$28 sps:$4 sm:$0xff]   ;;  %v1450_v50 = vld [vmem:[#allocation5 + $0x160] sm:$0xff]  }
  0x6d   :  { %1244 = vmatprep.subr.bf16.mxu1 %v1413_v18  ;;  %v1446_v47 = vld [vmem:[#allocation5 + $0x118] sm:$0xff]   ;;  %v1449_v49 = vld [vmem:[#allocation2 + $0x70] ss:$28 sps:$4 sm:$0xff]   ;;  %v1453_v52 = vld [vmem:[#allocation5 + $0x120] sm:$0xff]  }
  0x6e   :  { %1205 = vmatpush3.bf16.msra.mxu0 %v1412_v17  ;;  %v1451_v51 = vld [vmem:[#allocation2 + $0x7c] ss:$28 sps:$4 sm:$0xff]   ;;  %v1455_v54 = vld [vmem:[#allocation5 + $0x180] sm:$0xff]   ;;  %v1457_v56 = vld [vmem:[#allocation5 + $0x128] sm:$0xff]  }
  0x6f   :  { %1206 = vmatprep.subr.bf16.mxu0 %v1415_v20  ;;  %v1454_v53 = vld [vmem:[#allocation2 + $0x78] ss:$28 sps:$4 sm:$0xff]   ;;  %v1458_v57 = vld [vmem:[#allocation2 + $0xac] ss:$28 sps:$4 sm:$0xff]   ;;  %v1476_v8 = vld [vmem:[#allocation2 + $0x84] ss:$28 sps:$4 sm:$0xff]  }
  0x70   :  { %1245 = vmatpush3.bf16.msra.mxu1 %v1414_v19  ;;  %v1460_v58 = vld [vmem:[#allocation2 + $0xa8] ss:$28 sps:$4 sm:$0xff]   ;;  %v1461_v59 = vld [vmem:[#allocation5 + $0x170] sm:$0xff]   ;;  %v1466_v63 = vld [vmem:[#allocation5 + $0x178] sm:$0xff]  }
  0x71   :  { %1246 = vmatprep.subr.bf16.mxu1 %v1417_v22  ;;  %v1462_v60 = vld [vmem:[#allocation2 + $0xb4] ss:$28 sps:$4 sm:$0xff]   ;;  %v1467_v2 = vld [vmem:[#allocation5 + $0x138] sm:$0xff]   ;;  %v1473_v5 = vld [vmem:[#allocation2 + $0x4c] ss:$28 sps:$4 sm:$0xff]  }
  0x72   :  { %1207 = vmatpush3.bf16.msra.mxu0 %v1416_v21  ;;  %v1464_v61 = vld [vmem:[#allocation5 + $0x130] sm:$0xff]   ;;  %v1479_v6 = vld [vmem:[#allocation2 + $0x88] ss:$28 sps:$4 sm:$0xff]   ;;  %v1480_v9 = vld [vmem:[#allocation2 + $0xc0] ss:$28 sps:$4 sm:$0xff]  }
  0x73   :  { %1208 = vmatprep.subr.bf16.mxu0 %v1419_v24  ;;  %v1465_v62 = vld [vmem:[#allocation2 + $0xb0] ss:$28 sps:$4 sm:$0xff]   ;;  %v1471_v1 = vld [vmem:[#allocation2 + $0x18] ss:$28 sps:$4 sm:$0xff]   ;;  %v1475_v7 = vld [vmem:[#allocation2 + $0x48] ss:$28 sps:$4 sm:$0xff]  }
  0x74   :  { %1247 = vmatpush3.bf16.msra.mxu1 %v1418_v23  ;;  %v1470_v0 = vld [vmem:[#allocation2 + $0x14] ss:$28 sps:$4 sm:$0xff]   ;;  %v1478_v10 = vld [vmem:[#allocation2 + $0x80] ss:$28 sps:$4 sm:$0xff]   ;;  %v1105_v22 = vld [vmem:[#allocation7] ss:$0 sm:$0xff] }
  0x75   :  { %1248 = vmatprep.subr.bf16.mxu1 %v1421_v26  ;;  %v1468_v3 = vld [vmem:[#allocation2 + $0x10] ss:$28 sps:$4 sm:$0xff]   ;;  %v1481_v11 = vld [vmem:[#allocation2 + $0xbc] ss:$28 sps:$4 sm:$0xff]   ;;  %v1487_v16 = vld [vmem:[#allocation8 + $0x18] sm:$0xff]  }
  0x76   :  { %1209 = vmatpush3.bf16.msra.mxu0 %v1420_v25  ;;  %v1472_v4 = vld [vmem:[#allocation2 + $0x50] ss:$28 sps:$4 sm:$0xff]   ;;  %v1483_v12 = vld [vmem:[#allocation2 + $0xb8] ss:$28 sps:$4 sm:$0xff]   ;;  %v1491_v20 = vld [vmem:[#allocation8 + $0x38] sm:$0xff]  }
  0x77   :  { %1210 = vmatprep.subr.bf16.mxu0 %v1423_v28  ;;  %v1484_v13 = vld [vmem:[#allocation8] sm:$0xff]   ;;  %v1485_v14 = vld [vmem:[#allocation8 + $0x8] sm:$0xff]   ;;  %v1486_v15 = vld [vmem:[#allocation8 + $0x10] sm:$0xff]  }
  0x78   :  { %1249 = vmatpush3.bf16.msra.mxu1 %v1422_v27  ;;  %v1488_v17 = vld [vmem:[#allocation8 + $0x20] sm:$0xff]   ;;  %v1489_v18 = vld [vmem:[#allocation8 + $0x28] sm:$0xff]   ;;  %v1490_v19 = vld [vmem:[#allocation8 + $0x30] sm:$0xff]  }
  0x79   :  { %1250 = vmatprep.subr.bf16.mxu1 %v1425_v30 }
  0x7a   :  { %1211 = vmatpush3.bf16.msra.mxu0 %v1424_v29 }
  0x7b   :  { %1276 = vmatprep.subr.bf16.mxu0 %v1430_v34 }
  0x7c   :  { %1251 = vmatpush3.bf16.msra.mxu1 %v1429_v33 }
  0x7d   :  { %703 = vmatmul.mubr.bf16.vlgmr.msra.gmra.mrb[0].mxu0 %v1426_v31  ;;  %1333 = vmatprep.subr.bf16.mxu1 %v1455_v54 }
  0x7e   :  { %1277 = vmatpush3.bf16.msra.mxu0 %v1434_v37  ;;  %710 = vmatprep.mubr.bf16.mxu0 %v1437_v40 }
  0x7f   :  { %768 = vmatmul.mubr.bf16.vlgmr.msra.gmra.mrb[0].mxu1 %v1431_v35  ;;  %1278 = vmatprep.subr.bf16.mxu0 %v1435_v38 }
  0x80   :  { %775 = vmatprep.mubr.bf16.mxu1 %v1441_v43  ;;  %1334 = vmatpush3.bf16.msra.mxu1 %v1455_v54 }
  0x81   :  { %1367 = vmatprep.subr.bf16.mxu1 %v1484_v13 }
  0x82   :  { %1279 = vmatpush3.bf16.msra.mxu0 %v1436_v39 }
  0x83   :  { %1280 = vmatprep.subr.bf16.mxu0 %v1440_v42 }
  0x85   :  { %711 = vmatmul.mubr.bf16.gmra.mrb[4].mxu0 %v1439_v41 }
  0x86   :  { %1281 = vmatpush3.bf16.msra.mxu0 %v1443_v44  ;;  %718 = vmatprep.mubr.bf16.mxu0 %v1447_v48 }
  0x87   :  { %776 = vmatmul.mubr.bf16.gmra.mrb[4].mxu1 %v1444_v45  ;;  %1282 = vmatprep.subr.bf16.mxu0 %v1445_v46 }
  0x88   :  { %783 = vmatprep.mubr.bf16.mxu1 %v1451_v51 }
  0x8a   :  { %1283 = vmatpush3.bf16.msra.mxu0 %v1446_v47 }
  0x8b   :  { %1284 = vmatprep.subr.bf16.mxu0 %v1450_v50 }
  0x8d   :  { %719 = vmatmul.mubr.bf16.gmra.mrb[8].mxu0 %v1449_v49 }
  0x8e   :  { %1285 = vmatpush3.bf16.msra.mxu0 %v1453_v52  ;;  %726 = vmatprep.mubr.bf16.mxu0 %v1458_v57 }
  0x8f   :  { %784 = vmatmul.mubr.bf16.gmra.mrb[8].mxu1 %v1454_v53  ;;  %1286 = vmatprep.subr.bf16.mxu0 %v1456_v55 }
  0x90   :  { %791 = vmatprep.mubr.bf16.mxu1 %v1462_v60 }
  0x92   :  { %1287 = vmatpush3.bf16.msra.mxu0 %v1457_v56 }
  0x93   :  { %1288 = vmatprep.subr.bf16.mxu0 %v1461_v59 }
  0x95   :  { %727 = vmatmul.mubr.bf16.gmra.mrb[12].mxu0 %v1460_v58 }
  0x96   :  { %1289 = vmatpush3.bf16.msra.mxu0 %v1464_v61  ;;  %832 = vmatprep.mubr.bf16.mxu0 %v1470_v0 }
  0x97   :  { %792 = vmatmul.mubr.bf16.gmra.mrb[12].mxu1 %v1465_v62  ;;  %1290 = vmatprep.subr.bf16.mxu0 %v1466_v63 }
  0x98   :  { %1335 = vmatprep.mubr.msk.bf16.mxu1 %vm657_vm0, %v1471_v1 }
  0x9a   :  { %1291 = vmatpush3.bf16.msra.mxu0 %v1467_v2 }
  0x9b   :  { %1343 = vmatprep.subr.bf16.mxu0 %v1484_v13 }
  0x9d   :  { %833 = vmatmul.mubr.bf16.vlgmr.msra.gmra.mrb[16].mxu0 %v1468_v3 }
  0x9e   :  { %840 = vmatprep.mubr.bf16.mxu0 %v1473_v5  ;;  %1344 = vmatpush3.bf16.msra.mxu0 %v1484_v13 }
  0x9f   :  { %1336 = vmatmul.mubr.msk.bf16.vlgmr.msra.gmra.mrb[16].mxu1 %vm657_vm0, %v1472_v4  ;;  %1345 = vmatprep.subr.bf16.mxu0 %v1485_v14 }
  0xa0   :  { %1339 = vmatprep.mubr.msk.bf16.mxu1 %vm657_vm0, %v1479_v6  ;;  %1375 = vmatpush3.bf16.msra.mxu1 %v1484_v13 }
  0xa1   :  { %1368 = vmatprep.subr.bf16.mxu1 %v1485_v14 }
  0xa2   :  { %1346 = vmatpush3.bf16.msra.mxu0 %v1485_v14 }
  0xa3   :  { %1347 = vmatprep.subr.bf16.mxu0 %v1486_v15 }
  0xa4   :  { %1376 = vmatpush3.bf16.msra.mxu1 %v1485_v14 }
  0xa5   :  { %841 = vmatmul.mubr.bf16.gmra.mrb[20].mxu0 %v1475_v7  ;;  %1369 = vmatprep.subr.bf16.mxu1 %v1486_v15 }
  0xa6   :  { %848 = vmatprep.mubr.bf16.mxu0 %v1476_v8  ;;  %1348 = vmatpush3.bf16.msra.mxu0 %v1486_v15 }
  0xa7   :  { %1340 = vmatmul.mubr.msk.bf16.gmra.mrb[20].mxu1 %vm657_vm0, %v1480_v9  ;;  %1349 = vmatprep.subr.bf16.mxu0 %v1487_v16 }
  0xa8   :  { %1377 = vmatpush3.bf16.msra.mxu1 %v1486_v15 }
  0xa9   :  { %1370 = vmatprep.subr.bf16.mxu1 %v1487_v16 }
  0xaa   :  { %1350 = vmatpush3.bf16.msra.mxu0 %v1487_v16 }
  0xab   :  { %1351 = vmatprep.subr.bf16.mxu0 %v1488_v17 }
  0xac   :  { %1378 = vmatpush3.bf16.msra.mxu1 %v1487_v16 }
  0xad   :  { %849 = vmatmul.mubr.bf16.gmra.mrb[24].mxu0 %v1478_v10  ;;  %1371 = vmatprep.subr.bf16.mxu1 %v1488_v17 }
  0xae   :  { %856 = vmatprep.mubr.bf16.mxu0 %v1481_v11  ;;  %1352 = vmatpush3.bf16.msra.mxu0 %v1488_v17 }
  0xaf   :  { %1353 = vmatprep.subr.bf16.mxu0 %v1489_v18 }
  0xb0   :  { %1379 = vmatpush3.bf16.msra.mxu1 %v1488_v17 }
  0xb1   :  { %1372 = vmatprep.subr.bf16.mxu1 %v1489_v18 }
  0xb2   :  { %1354 = vmatpush3.bf16.msra.mxu0 %v1489_v18 }
  0xb3   :  { %1355 = vmatprep.subr.bf16.mxu0 %v1490_v19 }
  0xb4   :  { %1380 = vmatpush3.bf16.msra.mxu1 %v1489_v18 }
  0xb5   :  { %857 = vmatmul.mubr.bf16.gmra.mrb[28].mxu0 %v1483_v12  ;;  %1373 = vmatprep.subr.bf16.mxu1 %v1490_v19 }
  0xb6   :  { %1356 = vmatpush3.bf16.msra.mxu0 %v1490_v19 }
  0xb7   :  { %1357 = vmatprep.subr.bf16.mxu0 %v1491_v20 }
  0xb8   :  { %1381 = vmatpush3.bf16.msra.mxu1 %v1490_v19 }
  0xb9   :  { %1374 = vmatprep.subr.bf16.mxu1 %v1491_v20 }
  0xba   :  { %1358 = vmatpush3.bf16.msra.mxu0 %v1491_v20 }
  0xbc   :  { %1382 = vmatpush3.bf16.msra.mxu1 %v1491_v20 }
 0x150   :  { %v1212_v21 = vpop.f32.mrb[0].mxu0 }
 0x151   :  { %v1213_v23 = vpop.f32.mrb[1].mxu0 }
 0x152   :  { %v1214_v24 = vadd.f32 %v1213_v23, %v1212_v21  ;;  %v1215_v25 = vpop.f32.mrb[2].mxu0  ;;  %v1252_v26 = vpop.f32.mrb[0].mxu1 }
 0x153   :  { %v1216_v27 = vpop.f32.mrb[3].mxu0  ;;  %v1253_v30 = vpop.f32.mrb[1].mxu1 }
 0x154   :  { %v705_v28 = vadd.f32 %v1214_v24, %v1105_v22  ;;  %v1217_v29 = vadd.f32 %v1216_v27, %v1215_v25  ;;  %v1254_v31 = vadd.f32 %v1253_v30, %v1252_v26  ;;  %v1255_v32 = vpop.f32.mrb[2].mxu1 }
 0x155   :  { %v1256_v34 = vpop.f32.mrb[3].mxu1 }
 0x156   :  { %v708_v33 = vadd.f32 %v1217_v29, %v1105_v22  ;;  %v770_v35 = vadd.f32 %v1254_v31, %v705_v28  ;;  %v1257_v36 = vadd.f32 %v1256_v34, %v1255_v32 }
 0x158   :  { %v1218_v37 = vpop.f32.mrb[4].mxu0  ;;  %v773_v38 = vadd.f32 %v1257_v36, %v708_v33 }
 0x159   :  { %v1219_v39 = vpop.f32.mrb[5].mxu0 }
 0x15a   :  { %v1220_v40 = vadd.f32 %v1219_v39, %v1218_v37  ;;  %v1221_v41 = vpop.f32.mrb[6].mxu0  ;;  %v1258_v42 = vpop.f32.mrb[4].mxu1 }
 0x15b   :  { %v1222_v43 = vpop.f32.mrb[7].mxu0  ;;  %v1259_v46 = vpop.f32.mrb[5].mxu1 }
 0x15c   :  { %v713_v44 = vadd.f32 %v1220_v40, %v1105_v22  ;;  %v1223_v45 = vadd.f32 %v1222_v43, %v1221_v41  ;;  %v1260_v47 = vadd.f32 %v1259_v46, %v1258_v42  ;;  %v1261_v48 = vpop.f32.mrb[6].mxu1 }
 0x15d   :  { %v1262_v50 = vpop.f32.mrb[7].mxu1 }
 0x15e   :  { %v716_v49 = vadd.f32 %v1223_v45, %v1105_v22  ;;  %v778_v51 = vadd.f32 %v1260_v47, %v713_v44  ;;  %v1263_v52 = vadd.f32 %v1262_v50, %v1261_v48 }
 0x160   :  { %v1224_v53 = vpop.f32.mrb[8].mxu0  ;;  %v781_v54 = vadd.f32 %v1263_v52, %v716_v49 }
 0x161   :  { %v1225_v55 = vpop.f32.mrb[9].mxu0 }
 0x162   :  { %v1226_v56 = vadd.f32 %v1225_v55, %v1224_v53  ;;  %v1227_v57 = vpop.f32.mrb[10].mxu0  ;;  %v1264_v58 = vpop.f32.mrb[8].mxu1 }
 0x163   :  { %v1228_v59 = vpop.f32.mrb[11].mxu0  ;;  %v1265_v62 = vpop.f32.mrb[9].mxu1 }
 0x164   :  { %v721_v60 = vadd.f32 %v1226_v56, %v1105_v22  ;;  %v1229_v61 = vadd.f32 %v1228_v59, %v1227_v57  ;;  %v1266_v63 = vadd.f32 %v1265_v62, %v1264_v58  ;;  %v1267_v0 = vpop.f32.mrb[10].mxu1 }
 0x165   :  { %v1268_v2 = vpop.f32.mrb[11].mxu1 }
 0x166   :  { %v724_v1 = vadd.f32 %v1229_v61, %v1105_v22  ;;  %v786_v3 = vadd.f32 %v1266_v63, %v721_v60  ;;  %v1269_v4 = vadd.f32 %v1268_v2, %v1267_v0 }
 0x168   :  { %v1230_v5 = vpop.f32.mrb[12].mxu0  ;;  %v789_v6 = vadd.f32 %v1269_v4, %v724_v1 }
 0x169   :  { %v1231_v7 = vpop.f32.mrb[13].mxu0 }
 0x16a   :  { %v1232_v8 = vadd.f32 %v1231_v7, %v1230_v5  ;;  %v1233_v9 = vpop.f32.mrb[14].mxu0  ;;  %v1270_v10 = vpop.f32.mrb[12].mxu1 }
 0x16b   :  { %v1234_v11 = vpop.f32.mrb[15].mxu0  ;;  %v1271_v14 = vpop.f32.mrb[13].mxu1 }
 0x16c   :  { %v729_v12 = vadd.f32 %v1232_v8, %v1105_v22  ;;  %v1235_v13 = vadd.f32 %v1234_v11, %v1233_v9  ;;  %v1272_v15 = vadd.f32 %v1271_v14, %v1270_v10  ;;  %v1273_v16 = vpop.f32.mrb[14].mxu1 }
 0x16d   :  { %v1274_v18 = vpop.f32.mrb[15].mxu1 }
 0x16e   :  { %v732_v17 = vadd.f32 %v1235_v13, %v1105_v22  ;;  %v794_v19 = vadd.f32 %v1272_v15, %v729_v12  ;;  %v1275_v20 = vadd.f32 %v1274_v18, %v1273_v16 }
 0x170   :  { %v797_v21 = vadd.f32 %v1275_v20, %v732_v17  ;;  %v1292_v23 = vpop.f32.mrb[16].mxu0 }
 0x171   :  { %v1293_v24 = vpop.f32.mrb[17].mxu0 }
 0x172   :  { %v1337_v25 = vpop.f32.mrb[16].mxu1  ;;  %v1294_v26 = vadd.f32 %v1293_v24, %v1292_v23  ;;  %v1295_v27 = vpop.f32.mrb[18].mxu0 }
 0x173   :  { %v899_v28 = vpop.f32.mrb[17].mxu1  ;;  %v1296_v29 = vpop.f32.mrb[19].mxu0 }
 0x174   :  { %v1338_v30 = vpop.f32.mrb[18].mxu1  ;;  %v1297_v31 = vadd.f32 %v1296_v29, %v1295_v27  ;;  %v835_v32 = vadd.f32 %v1294_v26, %v770_v35 }
 0x175   :  { %v902_v33 = vpop.f32.mrb[19].mxu1 }
 0x176   :  { %v900_v34 = vadd.f32 %v899_v28, %v835_v32  ;;  %v838_v36 = vadd.f32 %v1297_v31, %v773_v38 }
 0x178   :  { %v903_v37 = vadd.f32 %v902_v33, %v838_v36  ;;  %v1298_v39 = vpop.f32.mrb[20].mxu0  ;;  %v930_v41 = vmax.f32 %v900_v34, 0.0 }
 0x179   :  { %v1299_v22 = vpop.f32.mrb[21].mxu0 }
 0x17a   :  { %v1341_v40 = vpop.f32.mrb[20].mxu1  ;;  %v931_v42 = vmax.f32 %v903_v37, 0.0  ;;  %v1300_v43 = vadd.f32 %v1299_v22, %v1298_v39  ;;  %v1301_v44 = vpop.f32.mrb[22].mxu0 }
 0x17b   :  { %v915_v45 = vpop.f32.mrb[21].mxu1  ;;  %v1302_v46 = vpop.f32.mrb[23].mxu0 }
 0x17c   :  { %v1342_v47 = vpop.f32.mrb[22].mxu1  ;;  %v938_v48 = vpack.c.bf16 %v931_v42, %v930_v41  ;;  %v843_v49 = vadd.f32 %v1300_v43, %v778_v51  ;;  %v1303_v50 = vadd.f32 %v1302_v46, %v1301_v44 }
 0x17d   :  { %v918_v52 = vpop.f32.mrb[23].mxu1 }
 0x17e   :  { %v908_v53 = vadd.f32 %v1337_v25, %v843_v49  ;;  %v846_v35 = vadd.f32 %v1303_v50, %v781_v54  ;;  %1359 = vmatprep.mubr.bf16.mxu0 %v938_v48 }
 0x180   :  { %v911_v55 = vadd.f32 %v1338_v30, %v846_v35  ;;  %v1304_v38 = vpop.f32.mrb[24].mxu0  ;;  %v932_v57 = vmax.f32 %v908_v53, 0.0 }
 0x181   :  { %v1305_v56 = vpop.f32.mrb[25].mxu0 }
 0x182   :  { %v933_v58 = vmax.f32 %v911_v55, 0.0  ;;  %v1306_v59 = vadd.f32 %v1305_v56, %v1304_v38  ;;  %v1307_v60 = vpop.f32.mrb[26].mxu0 }
 0x183   :  { %v1308_v61 = vpop.f32.mrb[27].mxu0 }
 0x184   :  { %v939_v62 = vpack.c.bf16 %v933_v58, %v932_v57  ;;  %v1309_v63 = vadd.f32 %v1308_v61, %v1307_v60  ;;  %v851_v0 = vadd.f32 %v1306_v59, %v786_v3 }
 0x186   :  { %v916_v1 = vadd.f32 %v915_v45, %v851_v0  ;;  %1360 = vmatmul.mubr.bf16.vlgmr.msra.gmra.mrb[32].mxu0 %v939_v62  ;;  %v854_v2 = vadd.f32 %v1309_v63, %v789_v6  ;;  %v1187_v6 = vld [vmem:[#allocation10] ss:$0 sm:$0xff] }
 0x188   :  { %v919_v51 = vadd.f32 %v918_v52, %v854_v2  ;;  %v1310_v4 = vpop.f32.mrb[28].mxu0  ;;  %v934_v7 = vmax.f32 %v916_v1, 0.0 }
 0x189   :  { %v1311_v5 = vpop.f32.mrb[29].mxu0 }
 0x18a   :  { %v935_v54 = vmax.f32 %v919_v51, 0.0  ;;  %v1312_v8 = vadd.f32 %v1311_v5, %v1310_v4  ;;  %v1313_v9 = vpop.f32.mrb[30].mxu0 }
 0x18b   :  { %v1314_v10 = vpop.f32.mrb[31].mxu0 }
 0x18c   :  { %v940_v11 = vpack.c.bf16 %v935_v54, %v934_v7  ;;  %v859_v12 = vadd.f32 %v1312_v8, %v794_v19  ;;  %v1315_v13 = vadd.f32 %v1314_v10, %v1313_v9 }
 0x18e   :  { %v924_v14 = vadd.f32 %v1341_v40, %v859_v12  ;;  %v862_v15 = vadd.f32 %v1315_v13, %v797_v21  ;;  %1363 = vmatprep.mubr.bf16.mxu1 %v940_v11 }
 0x190   :  { %v927_v16 = vadd.f32 %v1342_v47, %v862_v15  ;;  %v936_v17 = vmax.f32 %v924_v14, 0.0 }
 0x192   :  { %v937_v3 = vmax.f32 %v927_v16, 0.0 }
 0x194   :  { %v941_v18 = vpack.c.bf16 %v937_v3, %v936_v17 }
 0x196   :  { %1364 = vmatmul.mubr.bf16.vlgmr.msra.gmra.mrb[24].mxu1 %v941_v18 }
 0x259   :  { %v1361_v20 = vpop.f32.mrb[32].mxu0 }
 0x25a   :  { %v1056_v23 = vadd.f32 %v1361_v20, %v1187_v6  ;;  %v1047_v24 = vpop.f32.mrb[33].mxu0 }
 0x25b   :  { %v1048_v25 = vadd.f32 %v1187_v6, %v1047_v24  ;;  %v1362_v26 = vpop.f32.mrb[34].mxu0 }
 0x25c   :  { %1080 = vst [vmem:[#allocation11 + $0x10] sm:$0xff] %v1056_v23  ;;  %v1059_v27 = vadd.f32 %v1362_v26, %v1187_v6  ;;  %v1050_v28 = vpop.f32.mrb[35].mxu0 }
 0x25d   :  { %1078 = vst [vmem:[#allocation11] sm:$0xff] %v1048_v25  ;;  %v1051_v19 = vadd.f32 %v1187_v6, %v1050_v28 }
 0x25e   :  { %1081 = vst [vmem:[#allocation11 + $0x18] sm:$0xff] %v1059_v27 }
 0x25f   :  { %1079 = vst [vmem:[#allocation11 + $0x8] sm:$0xff] %v1051_v19 }
 0x269   :  { %v1365_v21 = vpop.f32.mrb[24].mxu1 }
 0x26a   :  { %v1072_v29 = vadd.f32 %v1365_v21, %v1187_v6  ;;  %v1063_v30 = vpop.f32.mrb[25].mxu1 }
 0x26b   :  { %v1064_v31 = vadd.f32 %v1187_v6, %v1063_v30  ;;  %v1366_v32 = vpop.f32.mrb[26].mxu1 }
 0x26c   :  { %1084 = vst [vmem:[#allocation11 + $0x30] sm:$0xff] %v1072_v29  ;;  %v1075_v33 = vadd.f32 %v1366_v32, %v1187_v6  ;;  %v1066_v34 = vpop.f32.mrb[27].mxu1 }
 0x26d   :  { %1082 = vst [vmem:[#allocation11 + $0x20] sm:$0xff] %v1064_v31  ;;  %v1067_v36 = vadd.f32 %v1187_v6, %v1066_v34 }
 0x26e   :  { %1085 = vst [vmem:[#allocation11 + $0x38] sm:$0xff] %v1075_v33 }
 0x26f   :  { %1083 = vst [vmem:[#allocation11 + $0x28] sm:$0xff] %v1067_v36 }
 0x270   :  { %1613 = shalt.err (!%p1610_p2)
}
 0x271   :  { %s1614_s7 = scalar_lea.hbm %s1755_s5, 1024 }
 0x272   :  { %p1615_p3 = scmp.ne.s32.totalorder %s1755_s5, %s1614_s7  ;;  %p1618_p4 = scmp.lt.u32.totalorder %s1614_s7, %s1755_s5 }
 0x274   :  { %p1620_p5 = pnand %p1618_p4, %p1615_p3 }
 0x276   :  { %1623 = shalt.err (!%p1620_p5)
}
 0x277   :  { %s1642_s13 = smov 128   ;;  %s1643_s14 = smov 8  }
 0x278   :  { %1097 = dma.vmem_to_hbm [thread:$0]  %s1092_s28, 1024, %s1755_s5, [#allocation4], %s1642_s13, %s1642_s13, %s1643_s14  }
 0x279   :  { %1630 = dma.done.wait [#allocation4], 1024  }
 0x27a   :  { %1631 = vsyncadd [#allocation4], 4294966272 }
 0x27b   :  { %1101 = vsyncpa [#allocation3], 1 }
 0x27c   :  { %1102 = vsyncpa [#allocation6], 1 }
 0x27d   :  { %1103 = vsyncpa [#allocation9], 1 }
 0x27e   :  { %1104 = vsyncpa [#allocation4], 1 }

</bundles_post_ra>
